<compile_context>
chip_gen: v6e
topology: v6e:2x2x1
jax: 0.10.0
libtpu: 0.0.40
codegen_flags: <defaults>
</compile_context>

<pallas_src>
import functools

import jax
import jax.numpy as jnp
from jax.experimental import pallas as pl
from jax.experimental.pallas import tpu as pltpu


_TILE_BUDGET_BYTES = 16 * 1024 * 1024  # per-grid-step working-set target
_VMEM_LIMIT_BYTES = 48 * 1024 * 1024   # > 32 MiB default scoped limit, < v7x's 64 MiB VMEM


def _pick_key_tile(lk, lq, d, dv, k_itemsize, v_itemsize, budget_bytes):
    """Largest multiple-of-8 divisor of Lk whose per-step working set fits the budget."""
    # Per key column a grid step holds ~2 live copies of the (Lq, TK) f32
    # score/exp tile plus double-buffered K and V rows and the scaled-V row.
    per_col = 2 * lq * 4 + 2 * d * k_itemsize + 3 * dv * v_itemsize
    cap = max(1, budget_bytes // per_col)
    if cap >= lk:
        return lk
    for tk in range(cap, 0, -1):
        if lk % tk == 0 and tk % 8 == 0:       # keep the (8, 128) tiling rule happy
            return tk
    return lk  # no aligned divisor fits the budget -> take the full axis (still correct)


def _attention_kernel(q_ref, k_ref, v_ref, o_ref, acc_ref, *, approx_reciprocal):
    k_step = pl.program_id(1)

    @pl.when(k_step == 0)
    def _init():
        acc_ref[...] = jnp.zeros_like(acc_ref)

    q = q_ref[...]                     # (Lq, D)   native dtype -> native MXU rate
    k = k_ref[...]                     # (TK, D)
    v = v_ref[...]                     # (TK, Dv)

    # score = Q @ K^T -> (Lq, TK), f32 accumulation on the MXU.
    s = jnp.einsum("qd,kd->qk", q, k, preferred_element_type=jnp.float32)

    # softmax over dim=1 of the (B, Lq, Lk) score == over the Lq (row) axis here.
    # Each key column normalizes independently, so this TK tile is self-contained.
    m = jnp.max(s, axis=0, keepdims=True)        # (1, TK)
    e = jnp.exp(s - m)                            # (Lq, TK), f32
    denom = jnp.sum(e, axis=0, keepdims=True)     # (1, TK)
    inv = pl.reciprocal(denom, approx=approx_reciprocal)

    # Fold 1/denom into value (TK*Dv multiply) instead of the weights (Lq*TK):
    #   out[q, d] = sum_k e[q, k] * (v[k, d] / denom[k]).
    inv_col = jnp.swapaxes(inv, 0, 1)             # (TK, 1)
    v_scaled = (v.astype(jnp.float32) * inv_col).astype(v.dtype)

    # weights @ value, accumulated in f32 scratch across key tiles.
    acc_ref[...] += jnp.dot(e.astype(v.dtype), v_scaled,
                            preferred_element_type=jnp.float32)

    @pl.when(k_step == pl.num_programs(1) - 1)
    def _finalize():
        o_ref[...] = acc_ref[...].astype(o_ref.dtype)


def attention_forward(query, key, value=None, *,
                      approx_reciprocal=True,
                      tile_budget_bytes=_TILE_BUDGET_BYTES,
                      vmem_limit_bytes=_VMEM_LIMIT_BYTES):
    """Pallas TPU implementation of AttentionBase.forward with dot-product score."""
    if value is None:
        value = key

    B, Lq, D = query.shape
    Bk, Lk, Dk = key.shape
    Bv, Lv, Dv = value.shape
    assert (Bk, Dk) == (B, D) and (Bv, Lv) == (B, Lk), "inconsistent operand shapes"

    out_dtype = jnp.result_type(query.dtype, key.dtype, value.dtype)

    TK = _pick_key_tile(Lk, Lq, D, Dv, key.dtype.itemsize, value.dtype.itemsize,
                        tile_budget_bytes)
    grid = (B, Lk // TK)

    kernel = functools.partial(_attention_kernel,
                               approx_reciprocal=approx_reciprocal)

    cost = pl.CostEstimate(
        flops=2 * B * Lq * Lk * (D + Dv) + 6 * B * Lq * Lk,
        transcendentals=B * Lq * Lk + B * Lk,
        bytes_accessed=(query.size * query.dtype.itemsize
                        + key.size * key.dtype.itemsize
                        + value.size * value.dtype.itemsize
                        + B * Lq * Dv * jnp.dtype(out_dtype).itemsize),
    )

    return pl.pallas_call(
        kernel,
        out_shape=jax.ShapeDtypeStruct((B, Lq, Dv), out_dtype),
        grid_spec=pltpu.PrefetchScalarGridSpec(
            num_scalar_prefetch=0,
            grid=grid,
            in_specs=[
                # Batch dim is squeezed (None) so the kernel works on plain 2-D tiles.
                pl.BlockSpec((None, Lq, D), lambda b, k: (b, 0, 0)),
                pl.BlockSpec((None, TK, D), lambda b, k: (b, k, 0)),
                pl.BlockSpec((None, TK, Dv), lambda b, k: (b, k, 0)),
            ],
            # Same output block across the k axis -> VMEM-resident across the reduction.
            out_specs=pl.BlockSpec((None, Lq, Dv), lambda b, k: (b, 0, 0)),
            scratch_shapes=[pltpu.VMEM((Lq, Dv), jnp.float32)],
        ),
        compiler_params=pltpu.CompilerParams(
            dimension_semantics=("parallel", "arbitrary"),
            vmem_limit_bytes=vmem_limit_bytes,
        ),
        cost_estimate=cost,
    )(query, key, value)


def _reference(query, key, value=None):
    if value is None:
        value = key
    s = jnp.einsum("bqd,bkd->bqk", query, key)
    w = jax.nn.softmax(s, axis=1)   # dim=1, matching F.softmax(score, dim=1)
    return jnp.einsum("bqk,bkd->bqd", w, value)


if __name__ == "__main__":
    # AttentionBase(dimensions=32): no learnable parameters, only `dimensions`.
    dimensions = 32
    B, Lq, Lk = 2, 8, 8

    k0, k1, k2 = jax.random.split(jax.random.PRNGKey(0), 3)
    query = jax.random.normal(k0, (B, Lq, dimensions), dtype=jnp.float32)
    key = jax.random.normal(k1, (B, Lk, dimensions), dtype=jnp.float32)
    value = jax.random.normal(k2, (B, Lk, dimensions), dtype=jnp.float32)

    ref = _reference(query, key, value)

    # 1) Exact-reciprocal path: tight check of kernel structure / numerics.
    out_exact = jax.block_until_ready(
        attention_forward(query, key, value, approx_reciprocal=False))
    assert out_exact.shape == (B, Lq, dimensions)
    assert jnp.allclose(out_exact, ref, atol=1e-5, rtol=1e-5)

    # 2) Default path (EUP approximate reciprocal): looser tolerance.
    out = jax.block_until_ready(attention_forward(query, key, value))
    assert out.shape == (B, Lq, dimensions)
    assert jnp.allclose(out, ref, atol=3e-2, rtol=3e-2)

    # 3) value=None defaults to key, same as the PyTorch forward.
    out2 = jax.block_until_ready(
        attention_forward(query, key, approx_reciprocal=False))
    assert jnp.allclose(out2, _reference(query, key), atol=1e-5, rtol=1e-5)

    # 4) Key/value-length tiling + accumulation path (force a tiny tile budget
    #    so TK < Lk and the k grid axis actually iterates).
    Lk2 = 64
    k3, k4 = jax.random.split(jax.random.PRNGKey(1), 2)
    key2 = jax.random.normal(k3, (B, Lk2, dimensions), dtype=jnp.float32)
    value2 = jax.random.normal(k4, (B, Lk2, dimensions), dtype=jnp.float32)
    out3 = jax.block_until_ready(
        attention_forward(query, key2, value2, approx_reciprocal=False,
                          tile_budget_bytes=8192))
    assert jnp.allclose(out3, _reference(query, key2, value2), atol=1e-4, rtol=1e-4)

    print("KERNEL_OK")
</pallas_src>

<mosaic_0001>
module attributes {stable_mosaic.version = 11 : i64} {
  func.func @_attention_kernel(%arg0: i32, %arg1: i32, %arg2: memref<1x8x32xf32, #tpu.memory_space<vmem>>, %arg3: memref<1x8x32xf32, #tpu.memory_space<vmem>>, %arg4: memref<1x8x32xf32, #tpu.memory_space<vmem>>, %arg5: memref<1x8x32xf32, #tpu.memory_space<vmem>>, %arg6: memref<8x32xf32, #tpu.memory_space<vmem>>) attributes {dimension_semantics = [#tpu.dimension_semantics<parallel>, #tpu.dimension_semantics<arbitrary>], iteration_bounds = array<i64: 2, 1>, scalar_prefetch = 0 : i64, scratch_operands = 1 : i64, tpu.core_type = #tpu.core_type<tc>, window_params = [{transform_indices = @transform_0, window_bounds = array<i64: 1, 8, 32>}, {transform_indices = @transform_1, window_bounds = array<i64: 1, 8, 32>}, {transform_indices = @transform_2, window_bounds = array<i64: 1, 8, 32>}, {transform_indices = @transform_3, window_bounds = array<i64: 1, 8, 32>}]} {
    %c0_i32 = arith.constant 0 : i32
    %0 = arith.cmpi eq, %arg1, %c0_i32 : i32
    %1 = arith.extui %0 : i1 to i32
    %c0_i32_0 = arith.constant 0 : i32
    %2 = arith.cmpi ne, %1, %c0_i32_0 : i32
    scf.if %2 {
      %cst_18 = arith.constant 0.000000e+00 : f32
      %28 = vector.broadcast %cst_18 : f32 to vector<8x32xf32>
      %c0_19 = arith.constant 0 : index
      %c0_20 = arith.constant 0 : index
      %29 = vector.load %arg6[%c0_19, %c0_20] : memref<8x32xf32, #tpu.memory_space<vmem>>, vector<8x32xf32>
      tpu.vector_store %arg6[%c0_19, %c0_20], %28 {strides = array<i32>} : memref<8x32xf32, #tpu.memory_space<vmem>>, vector<8x32xf32>,
    } else {
    }
    %c0 = arith.constant 0 : index
    %c0_1 = arith.constant 0 : index
    %c0_2 = arith.constant 0 : index
    %3 = vector.load %arg2[%c0, %c0_1, %c0_2] : memref<1x8x32xf32, #tpu.memory_space<vmem>>, vector<1x8x32xf32>
    %4 = vector.shape_cast %3 : vector<1x8x32xf32> to vector<8x32xf32>
    %c0_3 = arith.constant 0 : index
    %c0_4 = arith.constant 0 : index
    %c0_5 = arith.constant 0 : index
    %5 = vector.load %arg3[%c0_3, %c0_4, %c0_5] : memref<1x8x32xf32, #tpu.memory_space<vmem>>, vector<1x8x32xf32>
    %6 = vector.shape_cast %5 : vector<1x8x32xf32> to vector<8x32xf32>
    %c0_6 = arith.constant 0 : index
    %c0_7 = arith.constant 0 : index
    %c0_8 = arith.constant 0 : index
    %7 = vector.load %arg4[%c0_6, %c0_7, %c0_8] : memref<1x8x32xf32, #tpu.memory_space<vmem>>, vector<1x8x32xf32>
    %8 = vector.shape_cast %7 : vector<1x8x32xf32> to vector<8x32xf32>
    "tpu.trace_start"() <{level = 10 : i32, message = "qd,kd->qk"}> : () -> ()
    %cst = arith.constant dense<0.000000e+00> : vector<8x8xf32>
    %9 = tpu.matmul %4, %6, %cst {dimension_numbers = #tpu.dot_dimension_numbers<[1], [1], [0], [0], [0, 0, 1, 0], [], []>} : vector<8x32xf32>, vector<8x32xf32>, vector<8x8xf32> -> vector<8x8xf32>
    "tpu.trace_stop"() : () -> ()
    %cst_9 = arith.constant dense<0xFF800000> : vector<8xf32>
    %10 = vector.multi_reduction <maximumf>, %9, %cst_9 [0] : vector<8x8xf32> to vector<8xf32>
    %11 = vector.shape_cast %10 : vector<8xf32> to vector<1x8xf32>
    %12 = vector.broadcast %11 : vector<1x8xf32> to vector<8x8xf32>
    %13 = arith.subf %9, %12 : vector<8x8xf32>
    %14 = math.exp %13 : vector<8x8xf32>
    %cst_10 = arith.constant dense<0.000000e+00> : vector<8xf32>
    %15 = vector.multi_reduction <add>, %14, %cst_10 [0] : vector<8x8xf32> to vector<8xf32>
    %16 = vector.shape_cast %15 : vector<8xf32> to vector<1x8xf32>
    %17 = tpu.reciprocal %16 : vector<1x8xf32> -> vector<1x8xf32>
    %18 = tpu.transpose %17, [1, 0] : vector<1x8xf32> -> vector<8x1xf32>
    %19 = vector.broadcast %18 : vector<8x1xf32> to vector<8x32xf32>
    %20 = arith.mulf %8, %19 : vector<8x32xf32>
    %c0_11 = arith.constant 0 : index
    %c0_12 = arith.constant 0 : index
    %21 = vector.load %arg6[%c0_11, %c0_12] : memref<8x32xf32, #tpu.memory_space<vmem>>, vector<8x32xf32>
    %cst_13 = arith.constant dense<0.000000e+00> : vector<8x32xf32>
    %22 = tpu.matmul %14, %20, %cst_13 {dimension_numbers = #tpu.dot_dimension_numbers<[1], [0], [0], [1], [0, 0, 1, 1], [], []>} : vector<8x8xf32>, vector<8x32xf32>, vector<8x32xf32> -> vector<8x32xf32>
    %23 = arith.addf %21, %22 : vector<8x32xf32>
    %c0_14 = arith.constant 0 : index
    %c0_15 = arith.constant 0 : index
    %24 = vector.load %arg6[%c0_14, %c0_15] : memref<8x32xf32, #tpu.memory_space<vmem>>, vector<8x32xf32>
    tpu.vector_store %arg6[%c0_14, %c0_15], %23 {strides = array<i32>} : memref<8x32xf32, #tpu.memory_space<vmem>>, vector<8x32xf32>,
    %c0_i32_16 = arith.constant 0 : i32
    %25 = arith.cmpi eq, %arg1, %c0_i32_16 : i32
    %26 = arith.extui %25 : i1 to i32
    %c0_i32_17 = arith.constant 0 : i32
    %27 = arith.cmpi ne, %26, %c0_i32_17 : i32
    scf.if %27 {
      %c0_18 = arith.constant 0 : index
      %c0_19 = arith.constant 0 : index
      %28 = vector.load %arg6[%c0_18, %c0_19] : memref<8x32xf32, #tpu.memory_space<vmem>>, vector<8x32xf32>
      %c0_20 = arith.constant 0 : index
      %c0_21 = arith.constant 0 : index
      %c0_22 = arith.constant 0 : index
      %29 = vector.load %arg5[%c0_20, %c0_21, %c0_22] : memref<1x8x32xf32, #tpu.memory_space<vmem>>, vector<1x8x32xf32>
      %30 = vector.shape_cast %29 : vector<1x8x32xf32> to vector<8x32xf32>
      %31 = vector.shape_cast %28 : vector<8x32xf32> to vector<1x8x32xf32>
      tpu.vector_store %arg5[%c0_20, %c0_21, %c0_22], %31 {strides = array<i32>} : memref<1x8x32xf32, #tpu.memory_space<vmem>>, vector<1x8x32xf32>,
    } else {
    }
    return
  }
  func.func @transform_0(%arg0: i32, %arg1: i32) -> (i32, i32, i32) {
    %c0_i32 = arith.constant 0 : i32
    %c0_i32_0 = arith.constant 0 : i32
    %c0_i32_1 = arith.constant 0 : i32
    return %arg0, %c0_i32, %c0_i32_0 : i32, i32, i32
  }
  func.func @transform_1(%arg0: i32, %arg1: i32) -> (i32, i32, i32) {
    %c0_i32 = arith.constant 0 : i32
    %c0_i32_0 = arith.constant 0 : i32
    return %arg0, %arg1, %c0_i32 : i32, i32, i32
  }
  func.func @transform_2(%arg0: i32, %arg1: i32) -> (i32, i32, i32) {
    %c0_i32 = arith.constant 0 : i32
    %c0_i32_0 = arith.constant 0 : i32
    return %arg0, %arg1, %c0_i32 : i32, i32, i32
  }
  func.func @transform_3(%arg0: i32, %arg1: i32) -> (i32, i32, i32) {
    %c0_i32 = arith.constant 0 : i32
    %c0_i32_0 = arith.constant 0 : i32
    %c0_i32_1 = arith.constant 0 : i32
    return %arg0, %c0_i32, %c0_i32_0 : i32, i32, i32
  }
}

</mosaic_0001>

<bundles_post_ra>
// kernel: tpu_custom_call.1
= control target key start
LH: loop header
LB: loop body
LE: loop exit
PB: predicated region body
PF: predicated region fallthrough
CT: control target
= control target key end

     0   :  { %s1161_s0 = inlined_call_operand.hbm [shape: f32[2,8,32], index: 0, kind: input, shape index: {}]   ;;  %s1162_s1 = inlined_call_operand.hbm [shape: f32[2,8,32], index: 1, kind: input, shape index: {}]   ;;  %s1163_s2 = inlined_call_operand.hbm [shape: f32[2,8,32], index: 2, kind: input, shape index: {}]   ;;  %s1164_s3 = inlined_call_operand.hbm [shape: f32[2,8,32], index: 3, kind: output, shape index: {}]  }
   0x1   :  { %1168 = sst [smem:[#allocation15_spill]] %s1162_s1 }
   0x2   :  { %8 = vsyncpa [#allocation4], 0 }
   0x3   :  { %10 = vsyncpa [#allocation4 + $0x1], 0 }
   0x4   :  { %11 = vsyncpa [#allocation7], 0 }
   0x5   :  { %13 = vsyncpa [#allocation7 + $0x1], 0 }
   0x6   :  { %14 = vsyncpa [#allocation5], 0 }
   0x7   :  { %16 = vsyncpa [#allocation5 + $0x1], 0  ;;  %s949_s12 = smov 0   ;;  %s951_s13 = smov 0  }
   0x8   :  { %s953_s14 = smov 0   ;;  %s955_s15 = smov 0  }
   0x9   :  { %s957_s16 = smov 0   ;;  %s959_s17 = smov 0  }
   0xa LB: > { %1169 = sst [smem:[#allocation13_spill]] %s916_s16  ;;  %s980_s18 = sadd.s32 4294967295, %s920_s17   ;;  %s920_s17 = sphi %s959_s17, %s22_s17   ;;  %s916_s16 = sphi %s957_s16, %s1181_s16   ;;  %s912_s15 = sphi %s955_s15, %s1180_s15   ;;  %s908_s14 = sphi %s953_s14, %s1184_s14   ;;  %s904_s13 = sphi %s951_s13, %s1183_s13   ;;  %s900_s12 = sphi %s949_s12, %s1182_s12  }
   0xb   : > { %s637_s19 = sadd.s32 4294967294, %s920_s17   ;;  %s34_s20 = sadd.s32 1, %s916_s16 }
   0xc   : > { %s41_s21 = sadd.s32 1, %s908_s14  ;;  %p36_p0 = scmp.ge.s32.totalorder %s34_s20, 2 }
   0xd   : > { %p48_p1 = scmp.ne.s32.totalorder %s908_s14, %s904_s13  ;;  %p49_p2 = scmp.eq.s32.totalorder %s920_s17, 0 }
   0xe   : > { %p54_p3 = scmp.ne.s32.totalorder %s904_s13, %s900_s12  ;;  %s1186_s20 = smov (%p36_p0, %s34_s20), 0 }
   0xf   : > { %1170 = sst [smem:[#allocation14_spill]] %s1186_s20  ;;  %p992_p4 = por %p49_p2, %p48_p1 }
  0x10   : > { %p55_p5 = scmp.eq.s32.totalorder %s980_s18, 0  ;;  %s38_s23 = ssub.s32 %s916_s16, %s1186_s20 }
  0x11   : > { %p134_p6 = scmp.eq.s32.totalorder %s980_s18, 1  ;;  %p39_p7 = scmp.eq.s32.totalorder %s38_s23, 0 }
  0x12   : > { %p1000_p8 = por %p55_p5, %p54_p3  ;;  %p140_p10 = scmp.eq.s32.totalorder %s637_s19, 1 }
  0x13   : > { %p1004_p9 = por %p134_p6, %p48_p1  ;;  %p694_p13 = scmp.lt.s32.totalorder %s920_s17, 2 }
  0x14   : > { %s1009_s26 = scalar_select %p39_p7, %s908_s14, %s41_s21  }
  0x15   : > { %p1011_p11 = por %p140_p10, %p54_p3  ;;  %s1165_s28 = sand.u32 1, %s908_s14  }
  0x16   : > { %s1020_s29 = sshll.u32 %s1165_s28, 3  ;;  %s1023_s30 = sshll.u32 %s916_s16, 7 }
  0x17   : > { %p1027_p0 = pnand %p694_p13, %p992_p4  ;;  %s178_s5 = sand.u32 1, %s920_s17  }
  0x18   : > { %s1176_s1 = sld [smem:[#allocation15_spill]]  ;;  %s182_s9 = scalar_lea.vmem [#allocation6], %s1020_s29 }
  0x19   : > { %s190_s10 = sshll.u32 %s182_s9, 4  ;;  %p646_p1 = scmp.ge.s32.totalorder %s920_s17, 1  ;;  %s191_s10 = int_to_ptr.vmem [resolvable:$true] %s190_s10 }
  0x1a   : > { %p214_p2 = scmp.lt.s32.totalorder %s920_s17, 3  ;;  %s1039_s11 = scalar_lea.sflag [#allocation7], %s178_s5 }
  0x1b   : > { %p754_p3 = pneg %p1027_p0  ;;  %s765_s19 = scalar_lea.vmem %s191_s10, 128 }
  0x1c   : > { %p766_p4 = scmp.ne.s32.totalorder %s191_s10, %s765_s19  ;;  %s922_s21 = smov [#allocation6]  }
  0x1d   : > { %s770_s22 = sshll.u32 %s922_s21, 4  ;;  %s771_s22 = int_to_ptr.vmem [resolvable:$false] %s770_s22 }
  0x1e   : > { %s188_s8 = scalar_lea.hbm %s1176_s1, %s1023_s30  ;;  %p768_p5 = pnand %p766_p4, %p754_p3 }
  0x1f   : > { %s772_s23 = scalar_lea.vmem %s771_s22, 256  ;;  %p773_p7 = scmp.lt.s32.totalorder %s191_s10, %s771_s22 }
  0x20   : > { %p769_p6 = pneg %p768_p5  ;;  %p774_p10 = scmp.lt.s32.totalorder %s772_s23, %s765_s19 }
  0x22   : > { %p775_p13 = por %p774_p10, %p773_p7 }
  0x24   : > { %p776_p12 = pnand %p775_p13, %p769_p6 }
  0x26   : > { %779 = shalt.err (!%p776_p12)
}
  0x27   : > { %686 = dma.hbm_to_vmem [thread:$0]  (!%p1027_p0), %s188_s8, 128, %s191_s10, %s1039_s11  }
  0x28   : > { %p1053_p4 = pnand %p646_p1, %p214_p2  ;;  %s169_s9 = scalar_lea.hbm %s1161_s0, %s1023_s30 }
  0x29   : > { %s164_s19 = scalar_lea.vmem [#allocation3], %s1020_s29  ;;  %s207_s28 = scalar_lea.hbm %s1163_s2, %s1023_s30 }
  0x2a   : > { %s171_s21 = sshll.u32 %s164_s19, 4  ;;  %s1178_s1 = sand.u32 1, %s908_s14   ;;  %s172_s21 = int_to_ptr.vmem [resolvable:$true] %s171_s21 }
  0x2b   : > { %s161_s20 = scalar_lea.sflag [#allocation4], %s1178_s1  ;;  %s793_s8 = scalar_lea.vmem %s172_s21, 128 }
  0x2c   : > { %p794_p12 = scmp.ne.s32.totalorder %s172_s21, %s793_s8  ;;  %s923_s10 = smov [#allocation3]  }
  0x2d   : > { %s798_s16 = sshll.u32 %s923_s10, 4  ;;  %s799_s16 = int_to_ptr.vmem [resolvable:$false] %s798_s16 }
  0x2e   : > { %p796_p1 = pnand %p794_p12, %p754_p3  ;;  %s800_s6 = scalar_lea.vmem %s799_s16, 256 }
  0x2f   : > { %p801_p5 = scmp.lt.s32.totalorder %s172_s21, %s799_s16  ;;  %p802_p6 = scmp.lt.s32.totalorder %s800_s6, %s793_s8 }
  0x30   : > { %p797_p2 = pneg %p796_p1 }
  0x31   : > { %p803_p7 = por %p802_p6, %p801_p5 }
  0x33   : > { %p804_p10 = pnand %p803_p7, %p797_p2 }
  0x35   : > { %807 = shalt.err (!%p804_p10)
}
  0x36   : > { %683 = dma.hbm_to_vmem [thread:$0]  (!%p1027_p0), %s169_s9, 128, %s172_s21, %s161_s20  }
  0x37   : > { %s201_s1 = scalar_lea.vmem [#allocation8], %s1020_s29  ;;  %s924_s22 = smov [#allocation8]  }
  0x38   : > { %s209_s7 = sshll.u32 %s201_s1, 4  ;;  %s826_s16 = sshll.u32 %s924_s22, 4  ;;  %s210_s7 = int_to_ptr.vmem [resolvable:$true] %s209_s7  ;;  %s827_s16 = int_to_ptr.vmem [resolvable:$false] %s826_s16 }
  0x39   : > { %s821_s19 = scalar_lea.vmem %s210_s7, 128  ;;  %s828_s23 = scalar_lea.vmem %s827_s16, 256 }
  0x3a   : > { %p822_p13 = scmp.ne.s32.totalorder %s210_s7, %s821_s19  ;;  %p829_p2 = scmp.lt.s32.totalorder %s210_s7, %s827_s16 }
  0x3b   : > { %p830_p5 = scmp.lt.s32.totalorder %s828_s23, %s821_s19 }
  0x3c   : > { %p824_p12 = pnand %p822_p13, %p754_p3 }
  0x3d   : > { %p831_p6 = por %p830_p5, %p829_p2 }
  0x3e   : > { %p825_p1 = pneg %p824_p12 }
  0x40   : > { %p832_p7 = pnand %p831_p6, %p825_p1 }
  0x42   : > { %835 = shalt.err (!%p832_p7)
}
  0x43   : > { %689 = dma.hbm_to_vmem [thread:$0]  (!%p1027_p0), %s207_s28, 128, %s210_s7, %s1039_s11  }
  0x44   : > { %218 = sbr.rel (%p1053_p4) target bundleno = 802 (0x322), region = 32  ;;  %s1088_s9 = sand.u32 (!%p1053_p4), 1, %s904_s13  }
  0x45   : > { %s1091_s21 = sshll.u32 (!%p1053_p4), %s1088_s9, 3  ;;  %s221_s4 = scalar_lea.sflag (!%p1053_p4), [#allocation4], %s1088_s9 }
  0x46   : > { %s224_s8 = scalar_lea.vmem (!%p1053_p4), [#allocation3], %s1091_s21 }
  0x49   : > { %887 = dma.done.wait (%p1000_p8), %s221_s4, 128  }
  0x4a   : > { %889 = vsyncadd (%p1000_p8), %s221_s4, 4294967168  ;;  %s229_s28 = sand.u32 1, %s980_s18   ;;  %s233_s11 = scalar_lea.vmem [#allocation6], %s1091_s21 }
  0x4b   : > { %s230_s30 = scalar_lea.sflag [#allocation7], %s229_s28 }
  0x4c   : > { %891 = dma.done.wait (%p1000_p8), %s230_s30, 256  }
  0x4d   : > { %893 = vsyncadd (%p1000_p8), %s230_s30, 4294967040  ;;  %vm279_vm0 = vcmask 261120   ;;  %v925_v0 = vmov 0.0   ;;  %vm926_vm1 = vmmov 0   ;;  %v282_v1 = vld [vmem:[%s233_s11] sm:$0xff]  ;;  %v281_v2 = vld [vmem:[%s224_s8] sm:$0xff] }
  0x4e   : > { %662 = vmatprep.subr.mxu0 %v925_v0  ;;  %280 = vst.msk [vmem:[#allocation2] sm:$0xff] %vm279_vm0, %v925_v0  ;;  %664 = vmatprep.mubr.msk.f32.mxu0 %vm926_vm1, %v925_v0  ;;  %vm361_vm2 = vcmask 64512   ;;  %v927_v23 = vmov 0   ;;  %s242_s18 = scalar_lea.vmem [#allocation8], %s1091_s21  ;;  %s655_s24 = sshll.u32 %s912_s15, 7 }
  0x4f   : > { %667 = vmatprep.subr.mxu1 %v925_v0  ;;  %669 = vmatprep.mubr.msk.f32.mxu1 %vm926_vm1, %v925_v0  ;;  %v283_v25 = vld [vmem:[%s242_s18] sm:$0xff]  ;;  %s274_s5 = scalar_lea.vmem [#allocation9], %s1091_s21  ;;  %s1118_s7 = scalar_lea.hbm %s1164_s3, %s655_s24 }
  0x50   : > { %663 = vmatpush3.xpose.msk.msra.mxu0 %vm279_vm0, %v282_v1  ;;  %s513_s10 = sshll.u32 %s274_s5, 4  ;;  %s500_s19 = scalar_lea.sflag [#allocation5], %s1088_s9  ;;  %s514_s10 = int_to_ptr.vmem [resolvable:$true] %s513_s10 }
  0x51   : > { %s836_s22 = scalar_lea.vmem %s514_s10, 128  ;;  %s928_s16 = smov [#allocation9]  }
  0x52   : > { %p837_p8 = scmp.ne.s32.totalorder %s514_s10, %s836_s22  ;;  %s840_s23 = sshll.u32 %s928_s16, 4  ;;  %s841_s23 = int_to_ptr.vmem [resolvable:$false] %s840_s23 }
  0x53   : > { %665 = vmatmul.mubr.msk.f32.vlgmr.msra.gmra.mxu0 %vm279_vm0, %v281_v2  ;;  %s842_s15 = scalar_lea.vmem %s841_s23, 256  ;;  %p843_p4 = scmp.lt.s32.totalorder %s514_s10, %s841_s23 }
  0x54   : > { %p838_p0 = pnand %p837_p8, %p1004_p9  ;;  %p844_p10 = scmp.lt.s32.totalorder %s842_s15, %s836_s22 }
  0x55   : > { %v418_v28 = vld [vmem:[#allocation2] sm:$0xff] }
  0x56   : > { %p839_p3 = pneg %p838_p0  ;;  %p845_p13 = por %p844_p10, %p843_p4 }
  0x58   : > { %p846_p12 = pnand %p845_p13, %p839_p3 }
 0x113   : > { %v357_v3 = vpop.f32.mrf.mxu0 }
 0x114   : > { %v362_v4 = vsel %vm361_vm2, %v357_v3, -inf }
 0x115   : > { %v363_v5 = vrot.slane %v362_v4, 4  ;;  %v666_v6 = vpop.f32.mrf.mxu0 }
 0x117   : > { %v364_v7 = vmax.f32 %v362_v4, %v363_v5 }
 0x119   : > { %v365_v8 = vrot.slane %v364_v7, 2 }
 0x11b   : > { %v366_v9 = vmax.f32 %v364_v7, %v365_v8 }
 0x11d   : > { %v367_v10 = vrot.slane %v366_v9, 1 }
 0x11f   : > { %v368_v11 = vmax.f32 %v366_v9, %v367_v10 }
 0x121   : > { %v369_v12 = vsub.f32 %v357_v3, %v368_v11 }
 0x123   : > { %v370_v13 = vmul.f32 1.442695, %v369_v12 }
 0x125   : > { %748 = vpow2.f32 %v370_v13 }
 0x132   : > { %v749_v14 = vpop.eup %748 }
 0x133   : > { %v372_v15 = vsel %vm361_vm2, %v749_v14, 0.0 }
 0x134   : > { %v373_v16 = vrot.slane %v372_v15, 4 }
 0x136   : > { %v374_v17 = vadd.f32 %v373_v16, %v372_v15 }
 0x138   : > { %v375_v18 = vrot.slane %v374_v17, 2 }
 0x13a   : > { %v376_v19 = vadd.f32 %v375_v18, %v374_v17 }
 0x13c   : > { %v377_v20 = vrot.slane %v376_v19, 1 }
 0x13e   : > { %v378_v21 = vadd.f32 %v377_v20, %v376_v19 }
 0x140   : > { %750 = vrcp.f32 %v378_v21 }
 0x14d   : > { %v751_v22 = vpop.eup %750 }
 0x14e   : > { %380 = vxpose.xlu0.b32.start.end [1/1] (short) (narrow) %v751_v22, 8 }
 0x177   : > { %747 = vset.pattern.permute.xlu0 %v927_v23 }
 0x1ca   : > { %v396_v24 = vpop.trf.xlu0 }
 0x1cb   : > { %414 = vperm.xlu0 %747, %v396_v24  }
 0x246   : > { %v415_v26 = vpop.permute.xlu0 %414 }
 0x247   : > { %v417_v27 = vmul.f32 %v415_v26, %v283_v25 }
 0x249   : > { %668 = vmatpush3.msra.mxu1 %v417_v27 }
 0x24a   : > { %670 = vmatmul.mubr.msk.f32.vlgmr.msra.gmra.mxu1 %vm361_vm2, %v749_v14 }
 0x30a   : > { %v488_v29 = vpop.f32.mrf.mxu1 }
 0x30b   : > { %v492_v30 = vadd.f32 %v488_v29, %v418_v28 }
 0x30c   : > { %v671_v31 = vpop.f32.mrf.mxu1 }
 0x30d   : > { %493 = vst.msk [vmem:[#allocation2] sm:$0xff] %vm279_vm0, %v492_v30 }
 0x314   : > { %v497_v32 = vld [vmem:[#allocation2] sm:$0xff] }
 0x315   : > { %498 = vst.msk [vmem:[%s274_s5] sm:$0xff] %vm279_vm0, %v497_v32 }
 0x316   : > { %849 = shalt.err (!%p846_p12)
}
 0x317   : > { %s850_s20 = scalar_lea.hbm %s1118_s7, 128  ;;  %s854_s21 = scalar_lea.hbm %s1164_s3, 256 }
 0x318   : > { %p851_p1 = scmp.ne.s32.totalorder %s1118_s7, %s850_s20  ;;  %p855_p6 = scmp.lt.s32.totalorder %s1118_s7, %s1164_s3 }
 0x319   : > { %p856_p7 = scmp.lt.s32.totalorder %s854_s21, %s850_s20 }
 0x31a   : > { %p852_p2 = pnand %p851_p1, %p1004_p9 }
 0x31b   : > { %p857_p8 = por %p856_p7, %p855_p6 }
 0x31c   : > { %p853_p5 = pneg %p852_p2 }
 0x31e   : > { %p858_p0 = pnand %p857_p8, %p853_p5 }
 0x320   : > { %861 = shalt.err (!%p858_p0)
}
 0x321   : > { %678 = dma.vmem_to_hbm [thread:$0]  (%p1004_p9), %s514_s10, 128, %s1118_s7, %s500_s19  }
 0x322 PF: > { %s525_s28 = sand.u32 1, %s900_s12   ;;  %p1179_p3 = scmp.ge.s32.totalorder %s920_s17, 2 }
 0x323   : > { %s526_s30 = scalar_lea.sflag [#allocation5], %s525_s28 }
 0x324   : > { %p691_p4 = pnand %p1179_p3, %p1011_p11 }
 0x326   : > { %p692_p10 = pneg %p691_p4 }
 0x328   : > { %895 = dma.done.wait (%p692_p10), %s526_s30, 128  }
 0x329   : > { %897 = vsyncadd (%p692_p10), %s526_s30, 4294967168  ;;  %s22_s17 = sadd.s32 1, %s920_s17   ;;  %s1180_s15 = sld [smem:[#allocation13_spill]] }
 0x32a   : > { %p19_p13 = scmp.ge.s32.totalorder %s22_s17, 4   ;;  %s1181_s16 = sld [smem:[#allocation14_spill]] }
 0x32b   : > { %s1182_s12 = smov %s904_s13  ;;  %s1183_s13 = smov %s908_s14 }
 0x32c   : > { %s1184_s14 = smov %s1009_s26  ;;  %21 = sbr.rel (!%p19_p13) target bundleno = 10 (0xa), region = 109 }
 0x331   :  { %531 = vsyncpa [#allocation4], 1 }
 0x332   :  { %533 = vsyncpa [#allocation4 + $0x1], 1 }
 0x333   :  { %534 = vsyncpa [#allocation7], 1 }
 0x334   :  { %536 = vsyncpa [#allocation7 + $0x1], 1 }
 0x335   :  { %537 = vsyncpa [#allocation5], 1 }
 0x336   :  { %539 = vsyncpa [#allocation5 + $0x1], 1 }

</bundles_post_ra>
